<compile_context>
chip_gen: v5e
topology: v5e:2x2
jax: 0.10.0
libtpu: 0.0.40
codegen_flags: <defaults>
</compile_context>

<pallas_src>
import jax
import jax.numpy as jnp
from jax.experimental import pallas as pl
from jax.experimental.pallas import tpu as pltpu


def _round_up(n, m):
    return ((n + m - 1) // m) * m


def _cdiv(a, b):
    return -(-a // b)


# ---------------------------------------------------------------------------
# Kernel: whole VAE forward for one batch tile.
# ---------------------------------------------------------------------------
def vae_kernel(
    x_ref, eps_ref,
    # encoder params (mu/logvar head fused + 128-lane padded: ewml/ebml)
    ew1_ref, eb1_ref, ew2_ref, eb2_ref, ew3_ref, eb3_ref, ewml_ref, ebml_ref,
    # decoder params (dw1 rows / dw4 cols 128-lane padded)
    dw1_ref, db1_ref, dw2_ref, db2_ref, dw3_ref, db3_ref, dw4_ref, db4_ref,
    # single lane-dense output slab: [recon_pad | mu_pad | logvar_pad]
    out_ref,
):
    lat_pad = eps_ref.shape[-1]   # 128-aligned latent lane group
    out_pad = dw4_ref.shape[-1]   # 128-aligned recon lane group

    def linear(h_bf16, w_ref, b_ref):
        # MXU matmul in bf16 (weights stored bf16), f32 accumulation;
        # bias-add stays f32 (v5e VPU has no bf16 path).
        return (
            jnp.dot(h_bf16, w_ref[...], preferred_element_type=jnp.float32)
            + b_ref[...]
        )

    def relu_bf16(h_f32):
        # ReLU in f32, then repack once to bf16 for the next MXU push.
        # Dropout(p=0.3) == identity in eval mode.
        return jnp.maximum(h_f32, 0.0).astype(jnp.bfloat16)

    x = x_ref[...]                              # already bf16

    # ---------------- Encoder ----------------
    h = relu_bf16(linear(x, ew1_ref, eb1_ref))
    h = relu_bf16(linear(h, ew2_ref, eb2_ref))
    h = relu_bf16(linear(h, ew3_ref, eb3_ref))

    # fused mu|logvar head, each half a full 128-lane group
    ml = linear(h, ewml_ref, ebml_ref)          # (tb, 2*lat_pad), f32
    mu = ml[:, :lat_pad]
    logvar = ml[:, lat_pad:]

    # ------------- Reparameterize ------------
    eps = eps_ref[...].astype(jnp.float32)      # padded lanes are zero
    z = mu + eps * jnp.exp(0.5 * logvar)        # padded lanes -> exact zero

    # ---------------- Decoder ----------------
    d = relu_bf16(linear(z.astype(jnp.bfloat16), dw1_ref, db1_ref))
    d = relu_bf16(linear(d, dw2_ref, db2_ref))
    d = relu_bf16(linear(d, dw3_ref, db3_ref))
    recon = linear(d, dw4_ref, db4_ref)         # (tb, out_pad), f32

    # three dense, 128-lane-aligned stores (no concat, no masked stores)
    out_ref[:, :out_pad] = recon.astype(out_ref.dtype)
    out_ref[:, out_pad:out_pad + lat_pad] = mu.astype(out_ref.dtype)
    out_ref[:, out_pad + lat_pad:] = logvar.astype(out_ref.dtype)


# ---------------------------------------------------------------------------
# Wrapper
# ---------------------------------------------------------------------------
def _pick_batch_tiling(B, cap):
    """Batch tile size + grid length.

    - tiles as large as possible (<= cap) to amortize per-step overhead,
    - >= 2 tiles for non-tiny batches so v7x's two TensorCores both get work,
    - tb is a multiple of 8 (sublane alignment) so row padding stays tiny.
    """
    nt = max(1, _cdiv(B, cap))
    if B >= 64:
        nt = max(nt, 2)
    tb = _round_up(_cdiv(B, nt), 8)
    grid = _cdiv(B, tb)
    return tb, grid


def vae_forward(x, eps, params, *, max_batch_tile=1024):
    """x: (B, input_size) f32, eps: (B, latent_dim) f32.

    params: dict of f32 weights (in, out) and biases (1, out) — PyTorch
    nn.Linear weights pre-transposed.  Returns (recon, mu, logvar) in f32.
    """
    B, input_size = x.shape
    latent_dim = eps.shape[1]
    output_size = params["dw4"].shape[1]

    lat_pad = _round_up(latent_dim, 128)
    out_pad = _round_up(output_size, 128)
    slab = out_pad + 2 * lat_pad

    tb, grid_len = _pick_batch_tiling(B, max_batch_tile)
    B_pad = tb * grid_len

    # inputs: x in bf16 (halves DMA, it only feeds bf16 matmuls), eps stays f32
    x = x.astype(jnp.bfloat16)
    eps = eps.astype(jnp.float32)
    if B_pad != B:
        x = jnp.pad(x, ((0, B_pad - B), (0, 0)))
    if B_pad != B or lat_pad != latent_dim:
        eps = jnp.pad(eps, ((0, B_pad - B), (0, lat_pad - latent_dim)))

    def pad_cols(a, to):
        return a if a.shape[1] == to else jnp.pad(a, ((0, 0), (0, to - a.shape[1])))

    def pad_rows(a, to):
        return a if a.shape[0] == to else jnp.pad(a, ((0, to - a.shape[0]), (0, 0)))

    bf, f32 = jnp.bfloat16, jnp.float32

    # Fused mu|logvar head; each half zero-padded to a 128-lane group.
    ewml = jnp.concatenate(
        [pad_cols(params["ewm"], lat_pad), pad_cols(params["ewl"], lat_pad)],
        axis=1,
    ).astype(bf)
    ebml = jnp.concatenate(
        [pad_cols(params["ebm"], lat_pad), pad_cols(params["ebl"], lat_pad)],
        axis=1,
    ).astype(f32)

    param_args = [
        params["ew1"].astype(bf), params["eb1"].astype(f32),
        params["ew2"].astype(bf), params["eb2"].astype(f32),
        params["ew3"].astype(bf), params["eb3"].astype(f32),
        ewml, ebml,
        pad_rows(params["dw1"], lat_pad).astype(bf), params["db1"].astype(f32),
        params["dw2"].astype(bf), params["db2"].astype(f32),
        params["dw3"].astype(bf), params["db3"].astype(f32),
        pad_cols(params["dw4"], out_pad).astype(bf),
        pad_cols(params["db4"], out_pad).astype(f32),
    ]

    def batch_spec(feat):
        return pl.BlockSpec((tb, feat), lambda i: (i, 0))

    def rep_spec(arr):
        # replicated parameter block (same tile every grid step -> no re-DMA)
        return pl.BlockSpec(arr.shape, lambda i: (0, 0))

    out = pl.pallas_call(
        vae_kernel,
        grid=(grid_len,),
        in_specs=[batch_spec(input_size), batch_spec(lat_pad)]
        + [rep_spec(a) for a in param_args],
        out_specs=pl.BlockSpec((tb, slab), lambda i: (i, 0)),
        out_shape=jax.ShapeDtypeStruct((B_pad, slab), jnp.float32),
        compiler_params=pltpu.CompilerParams(
            dimension_semantics=("parallel",),
            vmem_limit_bytes=32 * 1024 * 1024,   # v5e scoped default is 16 MiB
        ),
    )(x, eps, *param_args)

    recon = out[:B, :output_size]
    mu = out[:B, out_pad:out_pad + latent_dim]
    logvar = out[:B, out_pad + lat_pad:out_pad + lat_pad + latent_dim]
    return recon, mu, logvar


# ---------------------------------------------------------------------------
# Deterministic parameter init (PyTorch-style uniform(-1/sqrt(fan_in), +))
# ---------------------------------------------------------------------------
def init_params(key, input_size, hidden_size, latent_dim, output_size):
    dims = {
        "ew1": (input_size, hidden_size),
        "ew2": (hidden_size, hidden_size),
        "ew3": (hidden_size, hidden_size),
        "ewm": (hidden_size, latent_dim),
        "ewl": (hidden_size, latent_dim),
        "dw1": (latent_dim, hidden_size),
        "dw2": (hidden_size, hidden_size),
        "dw3": (hidden_size, hidden_size),
        "dw4": (hidden_size, output_size),
    }
    params = {}
    keys = jax.random.split(key, 2 * len(dims))
    for i, (wname, (fan_in, fan_out)) in enumerate(dims.items()):
        bound = 1.0 / jnp.sqrt(jnp.asarray(fan_in, jnp.float32))
        params[wname] = jax.random.uniform(
            keys[2 * i], (fan_in, fan_out), jnp.float32, -bound, bound
        )
        bname = "b".join(wname.split("w"))  # ew1 -> eb1, dw4 -> db4
        params[bname] = jax.random.uniform(
            keys[2 * i + 1], (1, fan_out), jnp.float32, -bound, bound
        )
    return params


# ---------------------------------------------------------------------------
# Pure-JAX reference (same math: bf16 matmul operands, f32 accumulate,
# dropout identity)
# ---------------------------------------------------------------------------
def ref_forward(x, eps, p):
    bf = jnp.bfloat16

    def lin(h, wn, bn):
        return (
            jnp.dot(h.astype(bf), p[wn].astype(bf),
                    preferred_element_type=jnp.float32)
            + p[bn]
        )

    r = lambda h: jnp.maximum(h, 0.0)
    h = r(lin(x.astype(jnp.float32), "ew1", "eb1"))
    h = r(lin(h, "ew2", "eb2"))
    h = r(lin(h, "ew3", "eb3"))
    mu = lin(h, "ewm", "ebm")
    lv = lin(h, "ewl", "ebl")
    z = mu + eps * jnp.exp(0.5 * lv)
    d = r(lin(z, "dw1", "db1"))
    d = r(lin(d, "dw2", "db2"))
    d = r(lin(d, "dw3", "db3"))
    return lin(d, "dw4", "db4"), mu, lv


# ---------------------------------------------------------------------------
if __name__ == "__main__":
    input_size, hidden_size, latent_dim, output_size = 16, 32, 8, 16

    key = jax.random.PRNGKey(0)
    kparams, kdata = jax.random.split(key)
    params = init_params(kparams, input_size, hidden_size, latent_dim,
                         output_size)

    ok = True
    # small batch (grid=1, no padding) and a larger, non-multiple batch
    # (grid=2 tiles of 152 rows, 4 padded rows)
    for batch in (8, 300):
        kx, keps, kdata = jax.random.split(kdata, 3)
        x = jax.random.normal(kx, (batch, input_size), jnp.float32)
        eps = jax.random.normal(keps, (batch, latent_dim), jnp.float32)

        recon, mu, logvar = jax.block_until_ready(
            vae_forward(x, eps, params)
        )
        r_ref, mu_ref, lv_ref = ref_forward(x, eps, params)

        ok &= bool(jnp.allclose(recon, r_ref, atol=2e-3, rtol=2e-3))
        ok &= bool(jnp.allclose(mu, mu_ref, atol=2e-3, rtol=2e-3))
        ok &= bool(jnp.allclose(logvar, lv_ref, atol=2e-3, rtol=2e-3))

    assert ok, "Pallas VAE kernel mismatch vs. JAX reference"
    print("KERNEL_OK")
</pallas_src>

<mosaic_0001>
module attributes {stable_mosaic.version = 11 : i64} {
  func.func @vae_kernel(%arg0: i32, %arg1: memref<8x16xbf16, #tpu.memory_space<vmem>>, %arg2: memref<8x128xf32, #tpu.memory_space<vmem>>, %arg3: memref<16x32xbf16, #tpu.memory_space<vmem>>, %arg4: memref<1x32xf32, #tpu.memory_space<vmem>>, %arg5: memref<32x32xbf16, #tpu.memory_space<vmem>>, %arg6: memref<1x32xf32, #tpu.memory_space<vmem>>, %arg7: memref<32x32xbf16, #tpu.memory_space<vmem>>, %arg8: memref<1x32xf32, #tpu.memory_space<vmem>>, %arg9: memref<32x256xbf16, #tpu.memory_space<vmem>>, %arg10: memref<1x256xf32, #tpu.memory_space<vmem>>, %arg11: memref<128x32xbf16, #tpu.memory_space<vmem>>, %arg12: memref<1x32xf32, #tpu.memory_space<vmem>>, %arg13: memref<32x32xbf16, #tpu.memory_space<vmem>>, %arg14: memref<1x32xf32, #tpu.memory_space<vmem>>, %arg15: memref<32x32xbf16, #tpu.memory_space<vmem>>, %arg16: memref<1x32xf32, #tpu.memory_space<vmem>>, %arg17: memref<32x128xbf16, #tpu.memory_space<vmem>>, %arg18: memref<1x128xf32, #tpu.memory_space<vmem>>, %arg19: memref<8x384xf32, #tpu.memory_space<vmem>>) attributes {dimension_semantics = [#tpu.dimension_semantics<parallel>], iteration_bounds = array<i64: 1>, scalar_prefetch = 0 : i64, scratch_operands = 0 : i64, tpu.core_type = #tpu.core_type<tc>, window_params = [{transform_indices = @transform_0, window_bounds = array<i64: 8, 16>}, {transform_indices = @transform_1, window_bounds = array<i64: 8, 128>}, {pipeline_mode = #tpu.pipeline_mode<synchronous>, transform_indices = @transform_2, window_bounds = array<i64: 16, 32>}, {pipeline_mode = #tpu.pipeline_mode<synchronous>, transform_indices = @transform_3, window_bounds = array<i64: 1, 32>}, {pipeline_mode = #tpu.pipeline_mode<synchronous>, transform_indices = @transform_4, window_bounds = array<i64: 32, 32>}, {pipeline_mode = #tpu.pipeline_mode<synchronous>, transform_indices = @transform_5, window_bounds = array<i64: 1, 32>}, {pipeline_mode = #tpu.pipeline_mode<synchronous>, transform_indices = @transform_6, window_bounds = array<i64: 32, 32>}, {pipeline_mode = #tpu.pipeline_mode<synchronous>, transform_indices = @transform_7, window_bounds = array<i64: 1, 32>}, {pipeline_mode = #tpu.pipeline_mode<synchronous>, transform_indices = @transform_8, window_bounds = array<i64: 32, 256>}, {pipeline_mode = #tpu.pipeline_mode<synchronous>, transform_indices = @transform_9, window_bounds = array<i64: 1, 256>}, {pipeline_mode = #tpu.pipeline_mode<synchronous>, transform_indices = @transform_10, window_bounds = array<i64: 128, 32>}, {pipeline_mode = #tpu.pipeline_mode<synchronous>, transform_indices = @transform_11, window_bounds = array<i64: 1, 32>}, {pipeline_mode = #tpu.pipeline_mode<synchronous>, transform_indices = @transform_12, window_bounds = array<i64: 32, 32>}, {pipeline_mode = #tpu.pipeline_mode<synchronous>, transform_indices = @transform_13, window_bounds = array<i64: 1, 32>}, {pipeline_mode = #tpu.pipeline_mode<synchronous>, transform_indices = @transform_14, window_bounds = array<i64: 32, 32>}, {pipeline_mode = #tpu.pipeline_mode<synchronous>, transform_indices = @transform_15, window_bounds = array<i64: 1, 32>}, {pipeline_mode = #tpu.pipeline_mode<synchronous>, transform_indices = @transform_16, window_bounds = array<i64: 32, 128>}, {pipeline_mode = #tpu.pipeline_mode<synchronous>, transform_indices = @transform_17, window_bounds = array<i64: 1, 128>}, {transform_indices = @transform_18, window_bounds = array<i64: 8, 384>}]} {
    %c0 = arith.constant 0 : index
    %c0_0 = arith.constant 0 : index
    %0 = vector.load %arg1[%c0, %c0_0] : memref<8x16xbf16, #tpu.memory_space<vmem>>, vector<8x16xbf16>
    %c0_1 = arith.constant 0 : index
    %c0_2 = arith.constant 0 : index
    %1 = vector.load %arg3[%c0_1, %c0_2] : memref<16x32xbf16, #tpu.memory_space<vmem>>, vector<16x32xbf16>
    %cst = arith.constant dense<0.000000e+00> : vector<8x32xf32>
    %2 = tpu.matmul %0, %1, %cst {dimension_numbers = #tpu.dot_dimension_numbers<[1], [0], [0], [1], [0, 0, 1, 1], [], []>} : vector<8x16xbf16>, vector<16x32xbf16>, vector<8x32xf32> -> vector<8x32xf32>
    %c0_3 = arith.constant 0 : index
    %c0_4 = arith.constant 0 : index
    %3 = vector.load %arg4[%c0_3, %c0_4] : memref<1x32xf32, #tpu.memory_space<vmem>>, vector<1x32xf32>
    %4 = vector.broadcast %3 : vector<1x32xf32> to vector<8x32xf32>
    %5 = arith.addf %2, %4 : vector<8x32xf32>
    %cst_5 = arith.constant 0.000000e+00 : f32
    %6 = vector.broadcast %cst_5 : f32 to vector<8x32xf32>
    %7 = arith.maximumf %5, %6 : vector<8x32xf32>
    %8 = arith.truncf %7 : vector<8x32xf32> to vector<8x32xbf16>
    %c0_6 = arith.constant 0 : index
    %c0_7 = arith.constant 0 : index
    %9 = vector.load %arg5[%c0_6, %c0_7] : memref<32x32xbf16, #tpu.memory_space<vmem>>, vector<32x32xbf16>
    %cst_8 = arith.constant dense<0.000000e+00> : vector<8x32xf32>
    %10 = tpu.matmul %8, %9, %cst_8 {dimension_numbers = #tpu.dot_dimension_numbers<[1], [0], [0], [1], [0, 0, 1, 1], [], []>} : vector<8x32xbf16>, vector<32x32xbf16>, vector<8x32xf32> -> vector<8x32xf32>
    %c0_9 = arith.constant 0 : index
    %c0_10 = arith.constant 0 : index
    %11 = vector.load %arg6[%c0_9, %c0_10] : memref<1x32xf32, #tpu.memory_space<vmem>>, vector<1x32xf32>
    %12 = vector.broadcast %11 : vector<1x32xf32> to vector<8x32xf32>
    %13 = arith.addf %10, %12 : vector<8x32xf32>
    %cst_11 = arith.constant 0.000000e+00 : f32
    %14 = vector.broadcast %cst_11 : f32 to vector<8x32xf32>
    %15 = arith.maximumf %13, %14 : vector<8x32xf32>
    %16 = arith.truncf %15 : vector<8x32xf32> to vector<8x32xbf16>
    %c0_12 = arith.constant 0 : index
    %c0_13 = arith.constant 0 : index
    %17 = vector.load %arg7[%c0_12, %c0_13] : memref<32x32xbf16, #tpu.memory_space<vmem>>, vector<32x32xbf16>
    %cst_14 = arith.constant dense<0.000000e+00> : vector<8x32xf32>
    %18 = tpu.matmul %16, %17, %cst_14 {dimension_numbers = #tpu.dot_dimension_numbers<[1], [0], [0], [1], [0, 0, 1, 1], [], []>} : vector<8x32xbf16>, vector<32x32xbf16>, vector<8x32xf32> -> vector<8x32xf32>
    %c0_15 = arith.constant 0 : index
    %c0_16 = arith.constant 0 : index
    %19 = vector.load %arg8[%c0_15, %c0_16] : memref<1x32xf32, #tpu.memory_space<vmem>>, vector<1x32xf32>
    %20 = vector.broadcast %19 : vector<1x32xf32> to vector<8x32xf32>
    %21 = arith.addf %18, %20 : vector<8x32xf32>
    %cst_17 = arith.constant 0.000000e+00 : f32
    %22 = vector.broadcast %cst_17 : f32 to vector<8x32xf32>
    %23 = arith.maximumf %21, %22 : vector<8x32xf32>
    %24 = arith.truncf %23 : vector<8x32xf32> to vector<8x32xbf16>
    %c0_18 = arith.constant 0 : index
    %c0_19 = arith.constant 0 : index
    %25 = vector.load %arg9[%c0_18, %c0_19] : memref<32x256xbf16, #tpu.memory_space<vmem>>, vector<32x256xbf16>
    %cst_20 = arith.constant dense<0.000000e+00> : vector<8x256xf32>
    %26 = tpu.matmul %24, %25, %cst_20 {dimension_numbers = #tpu.dot_dimension_numbers<[1], [0], [0], [1], [0, 0, 1, 1], [], []>} : vector<8x32xbf16>, vector<32x256xbf16>, vector<8x256xf32> -> vector<8x256xf32>
    %c0_21 = arith.constant 0 : index
    %c0_22 = arith.constant 0 : index
    %27 = vector.load %arg10[%c0_21, %c0_22] : memref<1x256xf32, #tpu.memory_space<vmem>>, vector<1x256xf32>
    %28 = vector.broadcast %27 : vector<1x256xf32> to vector<8x256xf32>
    %29 = arith.addf %26, %28 : vector<8x256xf32>
    %30 = vector.extract_strided_slice %29 {offsets = [0, 0], sizes = [8, 128], strides = [1, 1]} : vector<8x256xf32> to vector<8x128xf32>
    %31 = vector.extract_strided_slice %29 {offsets = [0, 128], sizes = [8, 128], strides = [1, 1]} : vector<8x256xf32> to vector<8x128xf32>
    %c0_23 = arith.constant 0 : index
    %c0_24 = arith.constant 0 : index
    %32 = vector.load %arg2[%c0_23, %c0_24] : memref<8x128xf32, #tpu.memory_space<vmem>>, vector<8x128xf32>
    %cst_25 = arith.constant 5.000000e-01 : f32
    %33 = vector.broadcast %cst_25 : f32 to vector<8x128xf32>
    %34 = arith.mulf %33, %31 : vector<8x128xf32>
    %35 = math.exp %34 : vector<8x128xf32>
    %36 = arith.mulf %32, %35 : vector<8x128xf32>
    %37 = arith.addf %30, %36 : vector<8x128xf32>
    %38 = arith.truncf %37 : vector<8x128xf32> to vector<8x128xbf16>
    %c0_26 = arith.constant 0 : index
    %c0_27 = arith.constant 0 : index
    %39 = vector.load %arg11[%c0_26, %c0_27] : memref<128x32xbf16, #tpu.memory_space<vmem>>, vector<128x32xbf16>
    %cst_28 = arith.constant dense<0.000000e+00> : vector<8x32xf32>
    %40 = tpu.matmul %38, %39, %cst_28 {dimension_numbers = #tpu.dot_dimension_numbers<[1], [0], [0], [1], [0, 0, 1, 1], [], []>} : vector<8x128xbf16>, vector<128x32xbf16>, vector<8x32xf32> -> vector<8x32xf32>
    %c0_29 = arith.constant 0 : index
    %c0_30 = arith.constant 0 : index
    %41 = vector.load %arg12[%c0_29, %c0_30] : memref<1x32xf32, #tpu.memory_space<vmem>>, vector<1x32xf32>
    %42 = vector.broadcast %41 : vector<1x32xf32> to vector<8x32xf32>
    %43 = arith.addf %40, %42 : vector<8x32xf32>
    %cst_31 = arith.constant 0.000000e+00 : f32
    %44 = vector.broadcast %cst_31 : f32 to vector<8x32xf32>
    %45 = arith.maximumf %43, %44 : vector<8x32xf32>
    %46 = arith.truncf %45 : vector<8x32xf32> to vector<8x32xbf16>
    %c0_32 = arith.constant 0 : index
    %c0_33 = arith.constant 0 : index
    %47 = vector.load %arg13[%c0_32, %c0_33] : memref<32x32xbf16, #tpu.memory_space<vmem>>, vector<32x32xbf16>
    %cst_34 = arith.constant dense<0.000000e+00> : vector<8x32xf32>
    %48 = tpu.matmul %46, %47, %cst_34 {dimension_numbers = #tpu.dot_dimension_numbers<[1], [0], [0], [1], [0, 0, 1, 1], [], []>} : vector<8x32xbf16>, vector<32x32xbf16>, vector<8x32xf32> -> vector<8x32xf32>
    %c0_35 = arith.constant 0 : index
    %c0_36 = arith.constant 0 : index
    %49 = vector.load %arg14[%c0_35, %c0_36] : memref<1x32xf32, #tpu.memory_space<vmem>>, vector<1x32xf32>
    %50 = vector.broadcast %49 : vector<1x32xf32> to vector<8x32xf32>
    %51 = arith.addf %48, %50 : vector<8x32xf32>
    %cst_37 = arith.constant 0.000000e+00 : f32
    %52 = vector.broadcast %cst_37 : f32 to vector<8x32xf32>
    %53 = arith.maximumf %51, %52 : vector<8x32xf32>
    %54 = arith.truncf %53 : vector<8x32xf32> to vector<8x32xbf16>
    %c0_38 = arith.constant 0 : index
    %c0_39 = arith.constant 0 : index
    %55 = vector.load %arg15[%c0_38, %c0_39] : memref<32x32xbf16, #tpu.memory_space<vmem>>, vector<32x32xbf16>
    %cst_40 = arith.constant dense<0.000000e+00> : vector<8x32xf32>
    %56 = tpu.matmul %54, %55, %cst_40 {dimension_numbers = #tpu.dot_dimension_numbers<[1], [0], [0], [1], [0, 0, 1, 1], [], []>} : vector<8x32xbf16>, vector<32x32xbf16>, vector<8x32xf32> -> vector<8x32xf32>
    %c0_41 = arith.constant 0 : index
    %c0_42 = arith.constant 0 : index
    %57 = vector.load %arg16[%c0_41, %c0_42] : memref<1x32xf32, #tpu.memory_space<vmem>>, vector<1x32xf32>
    %58 = vector.broadcast %57 : vector<1x32xf32> to vector<8x32xf32>
    %59 = arith.addf %56, %58 : vector<8x32xf32>
    %cst_43 = arith.constant 0.000000e+00 : f32
    %60 = vector.broadcast %cst_43 : f32 to vector<8x32xf32>
    %61 = arith.maximumf %59, %60 : vector<8x32xf32>
    %62 = arith.truncf %61 : vector<8x32xf32> to vector<8x32xbf16>
    %c0_44 = arith.constant 0 : index
    %c0_45 = arith.constant 0 : index
    %63 = vector.load %arg17[%c0_44, %c0_45] : memref<32x128xbf16, #tpu.memory_space<vmem>>, vector<32x128xbf16>
    %cst_46 = arith.constant dense<0.000000e+00> : vector<8x128xf32>
    %64 = tpu.matmul %62, %63, %cst_46 {dimension_numbers = #tpu.dot_dimension_numbers<[1], [0], [0], [1], [0, 0, 1, 1], [], []>} : vector<8x32xbf16>, vector<32x128xbf16>, vector<8x128xf32> -> vector<8x128xf32>
    %c0_47 = arith.constant 0 : index
    %c0_48 = arith.constant 0 : index
    %65 = vector.load %arg18[%c0_47, %c0_48] : memref<1x128xf32, #tpu.memory_space<vmem>>, vector<1x128xf32>
    %66 = vector.broadcast %65 : vector<1x128xf32> to vector<8x128xf32>
    %67 = arith.addf %64, %66 : vector<8x128xf32>
    %c0_49 = arith.constant 0 : index
    %c0_50 = arith.constant 0 : index
    %68 = vector.load %arg19[%c0_49, %c0_50] : memref<8x384xf32, #tpu.memory_space<vmem>>, vector<8x128xf32>
    tpu.vector_store %arg19[%c0_49, %c0_50], %67 {strides = array<i32>} : memref<8x384xf32, #tpu.memory_space<vmem>>, vector<8x128xf32>,
    %c0_51 = arith.constant 0 : index
    %c128 = arith.constant 128 : index
    %69 = vector.load %arg19[%c0_51, %c128] : memref<8x384xf32, #tpu.memory_space<vmem>>, vector<8x128xf32>
    tpu.vector_store %arg19[%c0_51, %c128], %30 {strides = array<i32>} : memref<8x384xf32, #tpu.memory_space<vmem>>, vector<8x128xf32>,
    %c0_52 = arith.constant 0 : index
    %c256 = arith.constant 256 : index
    %70 = vector.load %arg19[%c0_52, %c256] : memref<8x384xf32, #tpu.memory_space<vmem>>, vector<8x128xf32>
    tpu.vector_store %arg19[%c0_52, %c256], %31 {strides = array<i32>} : memref<8x384xf32, #tpu.memory_space<vmem>>, vector<8x128xf32>,
    return
  }
  func.func @transform_0(%arg0: i32) -> (i32, i32) {
    %c0_i32 = arith.constant 0 : i32
    %c0_i32_0 = arith.constant 0 : i32
    return %arg0, %c0_i32 : i32, i32
  }
  func.func @transform_1(%arg0: i32) -> (i32, i32) {
    %c0_i32 = arith.constant 0 : i32
    %c0_i32_0 = arith.constant 0 : i32
    return %arg0, %c0_i32 : i32, i32
  }
  func.func @transform_2(%arg0: i32) -> (i32, i32) {
    %c0_i32 = arith.constant 0 : i32
    %c0_i32_0 = arith.constant 0 : i32
    %c0_i32_1 = arith.constant 0 : i32
    return %c0_i32, %c0_i32_0 : i32, i32
  }
  func.func @transform_3(%arg0: i32) -> (i32, i32) {
    %c0_i32 = arith.constant 0 : i32
    %c0_i32_0 = arith.constant 0 : i32
    %c0_i32_1 = arith.constant 0 : i32
    return %c0_i32, %c0_i32_0 : i32, i32
  }
  func.func @transform_4(%arg0: i32) -> (i32, i32) {
    %c0_i32 = arith.constant 0 : i32
    %c0_i32_0 = arith.constant 0 : i32
    %c0_i32_1 = arith.constant 0 : i32
    return %c0_i32, %c0_i32_0 : i32, i32
  }
  func.func @transform_5(%arg0: i32) -> (i32, i32) {
    %c0_i32 = arith.constant 0 : i32
    %c0_i32_0 = arith.constant 0 : i32
    %c0_i32_1 = arith.constant 0 : i32
    return %c0_i32, %c0_i32_0 : i32, i32
  }
  func.func @transform_6(%arg0: i32) -> (i32, i32) {
    %c0_i32 = arith.constant 0 : i32
    %c0_i32_0 = arith.constant 0 : i32
    %c0_i32_1 = arith.constant 0 : i32
    return %c0_i32, %c0_i32_0 : i32, i32
  }
  func.func @transform_7(%arg0: i32) -> (i32, i32) {
    %c0_i32 = arith.constant 0 : i32
    %c0_i32_0 = arith.constant 0 : i32
    %c0_i32_1 = arith.constant 0 : i32
    return %c0_i32, %c0_i32_0 : i32, i32
  }
  func.func @transform_8(%arg0: i32) -> (i32, i32) {
    %c0_i32 = arith.constant 0 : i32
    %c0_i32_0 = arith.constant 0 : i32
    %c0_i32_1 = arith.constant 0 : i32
    return %c0_i32, %c0_i32_0 : i32, i32
  }
  func.func @transform_9(%arg0: i32) -> (i32, i32) {
    %c0_i32 = arith.constant 0 : i32
    %c0_i32_0 = arith.constant 0 : i32
    %c0_i32_1 = arith.constant 0 : i32
    return %c0_i32, %c0_i32_0 : i32, i32
  }
  func.func @transform_10(%arg0: i32) -> (i32, i32) {
    %c0_i32 = arith.constant 0 : i32
    %c0_i32_0 = arith.constant 0 : i32
    %c0_i32_1 = arith.constant 0 : i32
    return %c0_i32, %c0_i32_0 : i32, i32
  }
  func.func @transform_11(%arg0: i32) -> (i32, i32) {
    %c0_i32 = arith.constant 0 : i32
    %c0_i32_0 = arith.constant 0 : i32
    %c0_i32_1 = arith.constant 0 : i32
    return %c0_i32, %c0_i32_0 : i32, i32
  }
  func.func @transform_12(%arg0: i32) -> (i32, i32) {
    %c0_i32 = arith.constant 0 : i32
    %c0_i32_0 = arith.constant 0 : i32
    %c0_i32_1 = arith.constant 0 : i32
    return %c0_i32, %c0_i32_0 : i32, i32
  }
  func.func @transform_13(%arg0: i32) -> (i32, i32) {
    %c0_i32 = arith.constant 0 : i32
    %c0_i32_0 = arith.constant 0 : i32
    %c0_i32_1 = arith.constant 0 : i32
    return %c0_i32, %c0_i32_0 : i32, i32
  }
  func.func @transform_14(%arg0: i32) -> (i32, i32) {
    %c0_i32 = arith.constant 0 : i32
    %c0_i32_0 = arith.constant 0 : i32
    %c0_i32_1 = arith.constant 0 : i32
    return %c0_i32, %c0_i32_0 : i32, i32
  }
  func.func @transform_15(%arg0: i32) -> (i32, i32) {
    %c0_i32 = arith.constant 0 : i32
    %c0_i32_0 = arith.constant 0 : i32
    %c0_i32_1 = arith.constant 0 : i32
    return %c0_i32, %c0_i32_0 : i32, i32
  }
  func.func @transform_16(%arg0: i32) -> (i32, i32) {
    %c0_i32 = arith.constant 0 : i32
    %c0_i32_0 = arith.constant 0 : i32
    %c0_i32_1 = arith.constant 0 : i32
    return %c0_i32, %c0_i32_0 : i32, i32
  }
  func.func @transform_17(%arg0: i32) -> (i32, i32) {
    %c0_i32 = arith.constant 0 : i32
    %c0_i32_0 = arith.constant 0 : i32
    %c0_i32_1 = arith.constant 0 : i32
    return %c0_i32, %c0_i32_0 : i32, i32
  }
  func.func @transform_18(%arg0: i32) -> (i32, i32) {
    %c0_i32 = arith.constant 0 : i32
    %c0_i32_0 = arith.constant 0 : i32
    return %arg0, %c0_i32 : i32, i32
  }
}

</mosaic_0001>

<bundles_post_ra>
// kernel: tpu_custom_call.1
= control target key start
LH: loop header
LB: loop body
LE: loop exit
PB: predicated region body
PF: predicated region fallthrough
CT: control target
= control target key end

     0   :  { %s1080_s0 = inlined_call_operand.hbm [shape: bf16[8,16], index: 0, kind: input, shape index: {}]   ;;  %s1081_s1 = inlined_call_operand.hbm [shape: f32[8,128], index: 1, kind: input, shape index: {}]   ;;  %s1082_s2 = inlined_call_operand.hbm [shape: bf16[16,32], index: 2, kind: input, shape index: {}]   ;;  %s1083_s3 = inlined_call_operand.hbm [shape: f32[1,32], index: 3, kind: input, shape index: {}]   ;;  %s1084_s4 = inlined_call_operand.vmem [shape: bf16[32,32], index: 4, kind: input, shape index: {}]   ;;  %s1085_s5 = inlined_call_operand.vmem [shape: f32[1,32], index: 5, kind: input, shape index: {}]   ;;  %s1086_s6 = inlined_call_operand.vmem [shape: bf16[32,32], index: 6, kind: input, shape index: {}]   ;;  %s1087_s7 = inlined_call_operand.vmem [shape: f32[1,32], index: 7, kind: input, shape index: {}]   ;;  %s1088_s8 = inlined_call_operand.vmem [shape: bf16[32,256], index: 8, kind: input, shape index: {}]   ;;  %s1089_s9 = inlined_call_operand.vmem [shape: f32[1,256], index: 9, kind: input, shape index: {}]   ;;  %s1090_s10 = inlined_call_operand.vmem [shape: bf16[128,32], index: 10, kind: input, shape index: {}]   ;;  %s1091_s11 = inlined_call_operand.vmem [shape: f32[1,32], index: 11, kind: input, shape index: {}]   ;;  %s1092_s12 = inlined_call_operand.vmem [shape: bf16[32,32], index: 12, kind: input, shape index: {}]   ;;  %s1093_s13 = inlined_call_operand.vmem [shape: f32[1,32], index: 13, kind: input, shape index: {}]   ;;  %s1094_s14 = inlined_call_operand.hbm [shape: bf16[32,32], index: 14, kind: input, shape index: {}]   ;;  %s1095_s15 = inlined_call_operand.vmem [shape: f32[1,32], index: 15, kind: input, shape index: {}]   ;;  %s1096_s16 = inlined_call_operand.hbm [shape: bf16[32,128], index: 16, kind: input, shape index: {}]   ;;  %s1097_s17 = inlined_call_operand.vmem [shape: f32[1,128], index: 17, kind: input, shape index: {}]   ;;  %s1098_s18 = inlined_call_operand.hbm [shape: f32[8,384], index: 18, kind: output, shape index: {}]  }
   0x1   :  { %1099 = sst [smem:[#allocation19_spill]] %s1080_s0 }
   0x2   :  { %1100 = sst [smem:[#allocation20_spill]] %s1081_s1 }
   0x3   :  { %1101 = sst [smem:[#allocation21_spill]] %s1082_s2 }
   0x4   :  { %1102 = sst [smem:[#allocation22_spill]] %s1097_s17 }
   0x5   :  { %1103 = sst [smem:[#allocation23_spill]] %s1098_s18 }
   0x6   :  { %23 = vsyncpa [#allocation3], 0 }
   0x7   :  { %24 = vsyncpa [#allocation6], 0 }
   0x8   :  { %25 = vsyncpa [#allocation9], 0 }
   0x9   :  { %26 = vsyncpa [#allocation12], 0  ;;  %s1104_s29 = sld [smem:[#allocation20_spill]] }
   0xf   :  { %s44_s30 = sshll.u32 %s1104_s29, 4  ;;  %s45_s30 = int_to_ptr.hbm [resolvable:$true] %s44_s30 }
  0x10   :  { %27 = vsyncpa [#allocation4], 0  ;;  %s861_s0 = smov [#allocation5]   ;;  %s68_s21 = sshll.u32 %s1083_s3, 4  ;;  %s69_s21 = int_to_ptr.hbm [resolvable:$true] %s68_s21 }
  0x11   :  { %s46_s19 = sshll.u32 %s861_s0, 4  ;;  %s862_s22 = smov [#allocation8]   ;;  %s47_s19 = int_to_ptr.vmem [resolvable:$true] %s46_s19 }
  0x12   :  { %49 = dma.hbm_to_vmem [thread:$0]  %s45_s30, 128, %s47_s19, [#allocation6]  }
  0x13   :  { %s70_s2 = sshll.u32 %s862_s22, 4  ;;  %s1105_s25 = sld [smem:[#allocation19_spill]]  ;;  %s71_s2 = int_to_ptr.vmem [resolvable:$true] %s70_s2 }
  0x14   :  { %73 = dma.hbm_to_vmem [thread:$0]  %s69_s21, 16, %s71_s2, [#allocation9]  }
  0x15   :  { %s1106_s29 = sld [smem:[#allocation21_spill]]  ;;  %s863_s18 = smov [#allocation2]  }
  0x16   :  { %s35_s17 = sshll.u32 %s863_s18, 4  ;;  %s864_s3 = smov [#allocation7]   ;;  %s36_s17 = int_to_ptr.vmem [resolvable:$true] %s35_s17 }
  0x17   :  { %s56_s30 = sshll.u32 %s864_s3, 4  ;;  %s865_s19 = smov 64   ;;  %s57_s30 = int_to_ptr.vmem [resolvable:$true] %s56_s30 }
  0x18   :  { %s866_s1 = smov 4   ;;  %s98_s23 = sshll.u32 %s1094_s14, 4  ;;  %s99_s23 = int_to_ptr.hbm [resolvable:$true] %s98_s23 }
  0x19   :  { %s33_s26 = sshll.u32 %s1105_s25, 4  ;;  %s867_s21 = smov [#allocation10]   ;;  %s34_s26 = int_to_ptr.hbm [resolvable:$true] %s33_s26 }
  0x1a   :  { %38 = dma.hbm_to_vmem [thread:$0]  %s34_s26, 64, %s36_s17, [#allocation3]  }
  0x1b   :  { %s54_s0 = sshll.u32 %s1106_s29, 4  ;;  %s100_s2 = sshll.u32 %s867_s21, 4  ;;  %s55_s0 = int_to_ptr.hbm [resolvable:$true] %s54_s0  ;;  %s101_s2 = int_to_ptr.vmem [resolvable:$true] %s100_s2 }
  0x1c   :  { %62 = dma.hbm_to_vmem [thread:$0]  %s55_s0, 128, %s57_s30, [#allocation6], %s865_s19, %s865_s19, %s866_s1  }
  0x1d   :  { %s113_s18 = sshll.u32 %s1096_s16, 4  ;;  %s868_s17 = smov [#allocation11]   ;;  %s114_s18 = int_to_ptr.hbm [resolvable:$true] %s113_s18 }
  0x1e   :  { %106 = dma.hbm_to_vmem [thread:$0]  %s99_s23, 256, %s101_s2, [#allocation9], %s865_s19, %s865_s19, %s866_s1  }
  0x1f   :  { %s115_s26 = sshll.u32 %s868_s17, 4  ;;  %s116_s26 = int_to_ptr.vmem [resolvable:$true] %s115_s26 }
  0x20   :  { %121 = dma.hbm_to_vmem [thread:$0]  %s114_s18, 256, %s116_s26, [#allocation12], %s865_s19, %s865_s19, %s866_s1  }
  0x21   :  { %851 = dma.done.wait [#allocation3], 64  }
  0x22   :  { %852 = vsyncadd [#allocation3], 4294967232 }
  0x23   :  { %853 = dma.done.wait [#allocation6], 256  }
  0x24   :  { %854 = vsyncadd [#allocation6], 4294967040 }
  0x25   :  { %855 = dma.done.wait [#allocation9], 272  }
  0x26   :  { %856 = vsyncadd [#allocation9], 4294967024 }
  0x27   :  { %857 = dma.done.wait [#allocation12], 256  }
  0x28   :  { %858 = vsyncadd [#allocation12], 4294967040  ;;  %v642_v0 = vld [vmem:[#allocation7] sm:$0xff]  ;;  %vm162_vm0 = vcmask 130048   ;;  %v149_v1 = vld [vmem:[#allocation2] sm:$0xf] }
  0x29   :  { %173 = vmatpush.bf16.msra.mxu0 %v642_v0  ;;  %v644_v2 = vld [vmem:[%s1084_s4 + $0x8] sm:$0xff]  ;;  %v643_v3 = vld [vmem:[%s1084_s4] sm:$0xff]  ;;  %v674_v4 = vld [vmem:[#allocation8] ss:$0 sm:$0xff]  ;;  %vm201_vm1 = vcmask 261120   ;;  %s1107_s0 = sld [smem:[#allocation22_spill]] }
  0x2a   :  { %211 = vmatpush.bf16.msra.mxu1 %v644_v2  ;;  %v646_v10 = vld [vmem:[%s1086_s6 + $0x8] sm:$0xff]  ;;  %v645_v11 = vld [vmem:[%s1086_s6] sm:$0xff]  ;;  %v649_v12 = vld [vmem:[%s1088_s8 + $0x14] sm:$0xf]  ;;  %s869_s3 = smov [#allocation13]   ;;  %s1108_s1 = sld [smem:[#allocation23_spill]] }
  0x2b   :  { %249 = vmatpush.bf16.msra.mxu2 %v646_v10  ;;  %v577_v13 = vld [vmem:[%s1088_s8 + $0x18] sm:$0xf0]  ;;  %v647_v14 = vld [vmem:[%s1088_s8 + $0x4] sm:$0xf]  ;;  %v569_v16 = vld [vmem:[%s1088_s8 + $0x8] sm:$0xf0] }
  0x2c   :  { %546 = vmatmul.msk.bf16.vlgmr.msra.gmra.mxu0 %vm162_vm0, %v149_v1  ;;  %v580_v15 = vor.u32 %v649_v12, %v577_v13  ;;  %v572_v17 = vor.u32 %v647_v14, %v569_v16  ;;  %v675_v18 = vld [vmem:[%s1085_s5] ss:$0 sm:$0xff]  ;;  %v575_v24 = vld [vmem:[%s1088_s8 + $0x10] sm:$0xf]  ;;  %v650_v25 = vld [vmem:[%s1088_s8 + $0x14] sm:$0xf0] }
  0x2d   :  { %v576_v26 = vor.u32 %v650_v25, %v575_v24  ;;  %v567_v27 = vld [vmem:[%s1088_s8] sm:$0xf]  ;;  %v648_v28 = vld [vmem:[%s1088_s8 + $0x4] sm:$0xf0]  ;;  %v658_v30 = vld [vmem:[%s1090_s10 + $0x38] sm:$0xff]  ;;  %s527_s30 = sshll.u32 %s869_s3, 4  ;;  %s528_s30 = int_to_ptr.vmem [resolvable:$true] %s527_s30 }
  0x2e   :  { %212 = vmatpush.bf16.msra.mxu1 %v643_v3  ;;  %310 = vmatpush.bf16.msrb.mxu0 %v580_v15  ;;  %v568_v29 = vor.u32 %v648_v28, %v567_v27  ;;  %v657_v31 = vld [vmem:[%s1090_s10 + $0x30] sm:$0xff]  ;;  %v656_v32 = vld [vmem:[%s1090_s10 + $0x28] sm:$0xff]  ;;  %v676_v33 = vld [vmem:[%s1087_s7] ss:$0 sm:$0xff] }
  0x2f   :  { %250 = vmatpush.bf16.msra.mxu2 %v645_v11  ;;  %297 = vmatpush.bf16.msra.mxu3 %v576_v26  ;;  %v655_v39 = vld [vmem:[%s1090_s10 + $0x20] sm:$0xff]  ;;  %v654_v40 = vld [vmem:[%s1090_s10 + $0x18] sm:$0xff]  ;;  %v653_v41 = vld [vmem:[%s1090_s10 + $0x10] sm:$0xff] }
  0x30   :  { %v652_v42 = vld [vmem:[%s1090_s10 + $0x8] sm:$0xff]  ;;  %v651_v43 = vld [vmem:[%s1090_s10] sm:$0xff]  ;;  %v661_v63 = vld [vmem:[#allocation10] sm:$0xff]  ;;  %s529_s8 = sshll.u32 %s1108_s1, 4  ;;  %s530_s8 = int_to_ptr.hbm [resolvable:$true] %s529_s8 }
  0x31   :  { %v660_v44 = vld [vmem:[%s1092_s12 + $0x8] sm:$0xff]  ;;  %v659_v45 = vld [vmem:[%s1092_s12] sm:$0xff] }
  0x32   :  { %311 = vmatpush.bf16.msrb.mxu0 %v572_v17  ;;  %392 = vmatpush.bf16.msrb.mxu1 %v658_v30  ;;  %v262_v46 = vld [vmem:[%s1089_s9] sm:$0x3]  ;;  %v317_v56 = vld [vmem:[#allocation5] sm:$0xff] }
  0x33   :  { %298 = vmatpush.bf16.msra.mxu3 %v568_v29  ;;  %436 = vmatpush.bf16.msrb.mxu2 %v660_v44  ;;  %v265_v47 = vperm.slane %v262_v46, 1  ;;  %v264_v51 = vperm.slane %v262_v46, 0  ;;  %v662_v62 = vld [vmem:[#allocation10 + $0x8] sm:$0xff] }
  0x34   :  { %v677_v0 = vld [vmem:[%s1091_s11] ss:$0 sm:$0xff] }
  0x35   :  { %v679_v14 = vld [vmem:[%s1095_s15] ss:$0 sm:$0xff] }
  0x36   :  { %393 = vmatpush.bf16.msrb.mxu1 %v657_v31 }
  0x37   :  { %437 = vmatpush.bf16.msrb.mxu2 %v659_v45  ;;  %474 = vmatpush.bf16.msrb.mxu3 %v662_v62 }
  0x3a   :  { %394 = vmatpush.bf16.msrb.mxu1 %v656_v32 }
  0x3b   :  { %475 = vmatpush.bf16.msrb.mxu3 %v661_v63 }
  0x3e   :  { %395 = vmatpush.bf16.msrb.mxu1 %v655_v39 }
  0x42   :  { %396 = vmatpush.bf16.msrb.mxu1 %v654_v40 }
  0x46   :  { %397 = vmatpush.bf16.msrb.mxu1 %v653_v41 }
  0x4a   :  { %398 = vmatpush.bf16.msrb.mxu1 %v652_v42 }
  0x4e   :  { %399 = vmatpush.bf16.msrb.mxu1 %v651_v43 }
  0xa9   :  { %v175_v5 = vpop.f32.mrf.mxu0 }
  0xaa   :  { %v176_v6 = vadd.f32 %v674_v4, %v175_v5 }
  0xac   :  { %v179_v7 = vmax.f32 %v176_v6, 0.0  ;;  %v664_v6 = vld [vmem:[#allocation11 + $0x8] sm:$0xff] }
  0xad   :  { %512 = vmatpush.bf16.msra.mxu0 %v664_v6 }
  0xae   :  { %v180_v8 = vpack.c.bf16 %v179_v7, %v179_v7  ;;  %v663_v7 = vld [vmem:[#allocation11] sm:$0xff] }
  0xb0   :  { %555 = vmatmul.msk.bf16.vlgmr.msra.gmra.mxu1 %vm201_vm1, %v180_v8  ;;  %v678_v8 = vld [vmem:[%s1093_s13] ss:$0 sm:$0xff] }
  0xb1   :  { %v177_v9 = vpop.f32.mrf.mxu0  ;;  %513 = vmatpush.bf16.msra.mxu0 %v663_v7 }
 0x12d   :  { %v214_v19 = vpop.f32.mrf.mxu1 }
 0x12e   :  { %v215_v20 = vadd.f32 %v675_v18, %v214_v19 }
 0x130   :  { %v218_v21 = vmax.f32 %v215_v20, 0.0  ;;  %v680_v20 = vld [vmem:[%s1107_s0] ss:$0 sm:$0xff] }
 0x132   :  { %v219_v22 = vpack.c.bf16 %v218_v21, %v218_v21 }
 0x134   :  { %564 = vmatmul.msk.bf16.vlgmr.msra.gmra.mxu2 %vm201_vm1, %v219_v22 }
 0x135   :  { %v216_v23 = vpop.f32.mrf.mxu1 }
 0x1b7   :  { %v252_v34 = vpop.f32.mrf.mxu2 }
 0x1b8   :  { %v253_v35 = vadd.f32 %v676_v33, %v252_v34 }
 0x1ba   :  { %v256_v36 = vmax.f32 %v253_v35, 0.0 }
 0x1bc   :  { %v257_v37 = vpack.c.bf16 %v256_v36, %v256_v36 }
 0x1be   :  { %581 = vmatmul.msk.bf16.vlgmr.msra.gmra.mxu3 %vm201_vm1, %v257_v37  ;;  %582 = vmatmul.msk.bf16.vlgmr.msrb.gmra.mxu0 %vm201_vm1, %v257_v37 }
 0x1bf   :  { %v254_v38 = vpop.f32.mrf.mxu2 }
 0x23b   :  { %v313_v48 = vpop.f32.mrf.mxu0 }
 0x23c   :  { %v314_v49 = vadd.f32 %v313_v48, %v265_v47 }
 0x23e   :  { %v318_v50 = vmul.f32 0.5, %v314_v49  ;;  %521 = vst [vmem:[#allocation13 + $0x10] sm:$0xff] %v314_v49 }
 0x240   :  { %v319_v52 = vmul.f32 1.442695, %v318_v50 }
 0x241   :  { %v300_v53 = vpop.f32.mrf.mxu3 }
 0x242   :  { %681 = vpow2.f32 %v319_v52  ;;  %v301_v54 = vadd.f32 %v300_v53, %v264_v51 }
 0x243   :  { %v315_v55 = vpop.f32.mrf.mxu0 }
 0x244   :  { %520 = vst [vmem:[#allocation13 + $0x8] sm:$0xff] %v301_v54 }
 0x248   :  { %v682_v57 = vpop.eup %681 }
 0x249   :  { %v321_v58 = vmul.f32 %v682_v57, %v317_v56  ;;  %v302_v59 = vpop.f32.mrf.mxu3 }
 0x24b   :  { %v322_v60 = vadd.f32 %v321_v58, %v301_v54 }
 0x24d   :  { %v323_v61 = vpack.c.bf16 %v322_v60, %v322_v60 }
 0x24f   :  { %400 = vmatmul.bf16.vlgmr.msrb.gmra.mxu1 %v323_v61 }
 0x2cc   :  { %v401_v1 = vpop.f32.mrf.mxu1 }
 0x2cd   :  { %v402_v2 = vadd.f32 %v677_v0, %v401_v1 }
 0x2cf   :  { %v405_v3 = vmax.f32 %v402_v2, 0.0 }
 0x2d1   :  { %v406_v4 = vpack.c.bf16 %v405_v3, %v405_v3 }
 0x2d3   :  { %623 = vmatmul.msk.bf16.vlgmr.msrb.gmra.mxu2 %vm201_vm1, %v406_v4 }
 0x2d4   :  { %v403_v5 = vpop.f32.mrf.mxu1 }
 0x356   :  { %v439_v9 = vpop.f32.mrf.mxu2 }
 0x357   :  { %v440_v10 = vadd.f32 %v678_v8, %v439_v9 }
 0x359   :  { %v443_v11 = vmax.f32 %v440_v10, 0.0 }
 0x35b   :  { %v444_v12 = vpack.c.bf16 %v443_v11, %v443_v11 }
 0x35d   :  { %632 = vmatmul.msk.bf16.vlgmr.msrb.gmra.mxu3 %vm201_vm1, %v444_v12 }
 0x35e   :  { %v441_v13 = vpop.f32.mrf.mxu2 }
 0x3e0   :  { %v477_v15 = vpop.f32.mrf.mxu3 }
 0x3e1   :  { %v478_v16 = vadd.f32 %v679_v14, %v477_v15 }
 0x3e3   :  { %v481_v17 = vmax.f32 %v478_v16, 0.0 }
 0x3e5   :  { %v482_v18 = vpack.c.bf16 %v481_v17, %v481_v17 }
 0x3e7   :  { %641 = vmatmul.msk.bf16.vlgmr.msra.gmra.mxu0 %vm201_vm1, %v482_v18 }
 0x3e8   :  { %v479_v19 = vpop.f32.mrf.mxu3 }
 0x464   :  { %v515_v21 = vpop.f32.mrf.mxu0 }
 0x465   :  { %v516_v22 = vadd.f32 %v680_v20, %v515_v21 }
 0x467   :  { %519 = vst [vmem:[#allocation13] sm:$0xff] %v516_v22 }
 0x468   :  { %532 = dma.vmem_to_hbm [thread:$0]  %s528_s30, 384, %s530_s8, [#allocation4]  }
 0x46c   :  { %v517_v23 = vpop.f32.mrf.mxu0 }
 0x46d   :  { %859 = dma.done.wait [#allocation4], 384  }
 0x46e   :  { %860 = vsyncadd [#allocation4], 4294966912 }
 0x46f   :  { %537 = vsyncpa [#allocation3], 1 }
 0x470   :  { %538 = vsyncpa [#allocation6], 1 }
 0x471   :  { %539 = vsyncpa [#allocation9], 1 }
 0x472   :  { %540 = vsyncpa [#allocation12], 1 }
 0x473   :  { %541 = vsyncpa [#allocation4], 1 }

</bundles_post_ra>
